<compile_context>
chip_gen: v7x
topology: tpu7x:2x2x1
jax: 0.10.0
libtpu: 0.0.40
codegen_flags: <defaults>
</compile_context>

<pallas_src>
import numpy as np
import jax
import jax.numpy as jnp
from jax import lax
from jax.experimental import pallas as pl
from jax.experimental.pallas import tpu as pltpu


def _sigmoid(x):
    return 1.0 / (1.0 + jnp.exp(-x))


# ----------------------------------------------------------------------------
# Generic fused linear (bf16 MXU operands, f32 accumulation)
# ----------------------------------------------------------------------------
def _linear_kernel(x_ref, w_ref, b_ref, o_ref):
    o_ref[...] = jnp.dot(x_ref[...].astype(jnp.bfloat16),
                         w_ref[...].astype(jnp.bfloat16),
                         preferred_element_type=jnp.float32) + b_ref[...]


def pallas_linear(x, w, b):
    """y = x @ w + b, w: (din, dout), b: (dout,).  Whole-array VMEM residency.
    # TODO(synk): tile with BlockSpecs + vmem_limit_bytes for production sizes (v7x 64 MiB VMEM).
    """
    lead = x.shape[:-1]
    K = x.shape[-1]
    N = w.shape[-1]
    x2 = x.reshape(-1, K).astype(jnp.float32)
    M = x2.shape[0]
    out = pl.pallas_call(
        _linear_kernel,
        out_shape=jax.ShapeDtypeStruct((M, N), jnp.float32),
    )(x2, w.astype(jnp.float32), b.reshape(1, N).astype(jnp.float32))
    return out.reshape(lead + (N,))


# ----------------------------------------------------------------------------
# Fused attention chain: linear att -> -100 mask -> (softmax) -> weighted pool
# ----------------------------------------------------------------------------
def _att_pool_kernel_factory(use_softmax):
    def kernel(h_ref, w_ref, b_ref, len_ref, k_ref):
        h = h_ref[...]                                       # (B, T, H)
        Bn, T, _ = h.shape
        att = jnp.sum(h * w_ref[...][None], axis=-1) + b_ref[...]    # (B, T)
        idx = lax.broadcasted_iota(jnp.int32, (Bn, T), 1)
        att = jnp.where(idx < len_ref[...], att, -100.0)
        if use_softmax:
            m = jnp.max(att, axis=-1, keepdims=True)
            e = jnp.exp(att - m)
            att = e * pl.reciprocal(jnp.sum(e, axis=-1, keepdims=True), approx=True)
        k_ref[...] = jnp.sum(h * att[:, :, None], axis=1)    # (B, H)
    return kernel


def att_pool(h, w, b, lens, use_softmax=True):
    Bn, T, H = h.shape
    return pl.pallas_call(
        _att_pool_kernel_factory(use_softmax),
        out_shape=jax.ShapeDtypeStruct((Bn, H), jnp.float32),
    )(h.astype(jnp.float32),
      w.reshape(1, H).astype(jnp.float32),
      b.reshape(1, 1).astype(jnp.float32),
      lens.reshape(Bn, 1).astype(jnp.int32))


# ----------------------------------------------------------------------------
# Output heads (fused)
# ----------------------------------------------------------------------------
def _mlp_head_kernel(x_ref, w1_ref, b1_ref, w2_ref, b2_ref, o_ref):
    t1 = jnp.tanh(jnp.dot(x_ref[...].astype(jnp.bfloat16),
                          w1_ref[...].astype(jnp.bfloat16),
                          preferred_element_type=jnp.float32) + b1_ref[...])
    o_ref[...] = jnp.dot(t1.astype(jnp.bfloat16), w2_ref[...].astype(jnp.bfloat16),
                         preferred_element_type=jnp.float32) + b2_ref[...]


def mlp_head(x, p1, p2):
    w1, b1 = p1
    w2, b2 = p2
    return pl.pallas_call(
        _mlp_head_kernel,
        out_shape=jax.ShapeDtypeStruct((x.shape[0], w2.shape[1]), jnp.float32),
    )(x, w1, b1.reshape(1, -1), w2, b2.reshape(1, -1))


def _col_score_kernel(k_ref, e_ref, wk_ref, bk_ref, wc_ref, bc_ref,
                      wo_ref, bo_ref, len_ref, o_ref):
    k = k_ref[...]                                # (B, H)
    e = e_ref[...]                                # (B, C, H)
    Bn, C, H = e.shape
    kp = jnp.dot(k.astype(jnp.bfloat16), wk_ref[...].astype(jnp.bfloat16),
                 preferred_element_type=jnp.float32) + bk_ref[...]
    ep = jnp.dot(e.reshape(Bn * C, H).astype(jnp.bfloat16),
                 wc_ref[...].astype(jnp.bfloat16),
                 preferred_element_type=jnp.float32) + bc_ref[...]
    hid = jnp.maximum(ep.reshape(Bn, C, H) + kp[:, None, :], 0.0)
    sc = jnp.sum(hid * wo_ref[...][None], axis=-1) + bo_ref[...]       # (B, C)
    idx = lax.broadcasted_iota(jnp.int32, (Bn, C), 1)
    o_ref[...] = jnp.where(idx < len_ref[...], sc, -100.0)


def col_score(K_cond_col, e_cond_col, params, col_num_j):
    B, C, H = e_cond_col.shape
    wk, bk = params["cond_col_out_K"]
    wc, bc = params["cond_col_out_col"]
    wo, bo = params["cond_col_out"]
    return pl.pallas_call(
        _col_score_kernel,
        out_shape=jax.ShapeDtypeStruct((B, C), jnp.float32),
    )(K_cond_col, e_cond_col, wk, bk.reshape(1, -1), wc, bc.reshape(1, -1),
      wo.T, bo.reshape(1, 1), col_num_j.reshape(B, 1).astype(jnp.int32))


def _op_score_kernel(k_ref, ce_ref, wk_ref, bk_ref, wc_ref, bc_ref,
                     w1_ref, b1_ref, w2_ref, b2_ref, o_ref):
    k = k_ref[...]                                # (B, H)
    ce = ce_ref[...]                              # (B, 4, H)
    Bn, F4, H = ce.shape
    kp = jnp.dot(k.astype(jnp.bfloat16), wk_ref[...].astype(jnp.bfloat16),
                 preferred_element_type=jnp.float32) + bk_ref[...]
    cp = jnp.dot(ce.reshape(Bn * F4, H).astype(jnp.bfloat16),
                 wc_ref[...].astype(jnp.bfloat16),
                 preferred_element_type=jnp.float32) + bc_ref[...]
    hid = (cp.reshape(Bn, F4, H) + kp[:, None, :]).reshape(Bn * F4, H)
    t1 = jnp.tanh(jnp.dot(hid.astype(jnp.bfloat16), w1_ref[...].astype(jnp.bfloat16),
                          preferred_element_type=jnp.float32) + b1_ref[...])
    o_ref[...] = jnp.dot(t1.astype(jnp.bfloat16), w2_ref[...].astype(jnp.bfloat16),
                         preferred_element_type=jnp.float32) + b2_ref[...]


def op_score(K_cond_op, col_emb, params):
    B, F4, H = col_emb.shape
    wk, bk = params["cond_op_out_K"]
    wc, bc = params["cond_op_out_col"]
    w1, b1 = params["cond_op_out_1"]
    w2, b2 = params["cond_op_out_2"]
    out = pl.pallas_call(
        _op_score_kernel,
        out_shape=jax.ShapeDtypeStruct((B * F4, w2.shape[1]), jnp.float32),
    )(K_cond_op, col_emb, wk, bk.reshape(1, -1), wc, bc.reshape(1, -1),
      w1, b1.reshape(1, -1), w2, b2.reshape(1, -1))
    return out.reshape(B, F4, w2.shape[1])


# ----------------------------------------------------------------------------
# att_flow (fully fused, incl. the reference's softmax over dim 0)
# ----------------------------------------------------------------------------
def _att_flow_kernel(c_ref, q_ref, wcq_ref, wc_ref, wq_ref, bias_ref, o_ref):
    c = c_ref[...]                        # (B, Tc, H)
    q = q_ref[...]                        # (B, Tq, H)
    wcq = wcq_ref[...]                    # (1, H)
    wc = wc_ref[...]
    wq = wq_ref[...]
    bias = bias_ref[...]                  # (1, 3)
    b_cq = bias[:, 0:1]
    b_c = bias[:, 1:2]
    b_q = bias[:, 2:3]
    cq = jnp.einsum("bih,bjh->bij", (c * wcq).astype(jnp.bfloat16),
                    q.astype(jnp.bfloat16),
                    preferred_element_type=jnp.float32) + b_cq
    sc = jnp.sum(c * wc, axis=-1, keepdims=True) + b_c        # (B, Tc, 1)
    sq = jnp.sum(q * wq, axis=-1) + b_q                       # (B, Tq)
    s = sc + sq[:, None, :] + cq                              # (B, Tc, Tq)
    m = jnp.max(s, axis=2, keepdims=True)
    e = jnp.exp(s - m)
    a = e * pl.reciprocal(jnp.sum(e, axis=2, keepdims=True), approx=True)
    c2q = jnp.einsum("bij,bjh->bih", a.astype(jnp.bfloat16), q.astype(jnp.bfloat16),
                     preferred_element_type=jnp.float32)
    smax = jnp.max(s, axis=2)                                 # (B, Tc)
    mm = jnp.max(smax, axis=1, keepdims=True)
    ee = jnp.exp(smax - mm)
    bb = ee * pl.reciprocal(jnp.sum(ee, axis=1, keepdims=True), approx=True)
    q2c = jnp.sum(bb[:, :, None] * c, axis=1)                 # (B, H)
    x = c + c2q + c * c2q + c * q2c[:, None, :]
    # reference: nn.Softmax() on a 3-D tensor -> softmax over dim 0 (batch)
    mx = jnp.max(x, axis=0, keepdims=True)
    ex = jnp.exp(x - mx)
    o_ref[...] = ex * pl.reciprocal(jnp.sum(ex, axis=0, keepdims=True), approx=True)


def att_flow(c, q, params):
    B, Tc, H = c.shape
    wcq, bcq = params["att_weight_cq"]
    wc, bc = params["att_weight_c"]
    wq, bq = params["att_weight_q"]
    biases = jnp.stack([bcq[0], bc[0], bq[0]]).reshape(1, 3).astype(jnp.float32)
    return pl.pallas_call(
        _att_flow_kernel,
        out_shape=jax.ShapeDtypeStruct((B, Tc, H), jnp.float32),
    )(c.astype(jnp.float32), q.astype(jnp.float32),
      wcq.T.astype(jnp.float32), wc.T.astype(jnp.float32),
      wq.T.astype(jnp.float32), biases)


# ----------------------------------------------------------------------------
# cond_str score: all 3 projections + ReLU + score + mask, grid=(B,), F4 folded
# ----------------------------------------------------------------------------
def _str_score_kernel(h_ref, g_ref, col_ref, wh_ref, bh_ref, wg_ref, bg_ref,
                      wc_ref, bc_ref, wo_ref, bo_ref, m_ref, o_ref):
    T, H = h_ref.shape
    FL, _ = g_ref.shape
    F4, _ = col_ref.shape
    L = FL // F4
    hp = jnp.dot(h_ref[...].astype(jnp.bfloat16), wh_ref[...].astype(jnp.bfloat16),
                 preferred_element_type=jnp.float32) + bh_ref[...]        # (T, H)
    gp = jnp.dot(g_ref[...].astype(jnp.bfloat16), wg_ref[...].astype(jnp.bfloat16),
                 preferred_element_type=jnp.float32) + bg_ref[...]        # (F4*L, H)
    cp = jnp.dot(col_ref[...].astype(jnp.bfloat16), wc_ref[...].astype(jnp.bfloat16),
                 preferred_element_type=jnp.float32) + bc_ref[...]        # (F4, H)
    gp = gp.reshape(F4, L, H)
    v = jnp.maximum(gp[:, :, None, :] + cp[:, None, None, :]
                    + hp[None, None, :, :], 0.0)                          # (F4, L, T, H)
    # TODO(synk): MXU matvec for this reduce was evaluated; kept as a lane reduce to
    # avoid a minor-dim-changing in-kernel relayout at these tiny shapes.
    score = jnp.sum(v * wo_ref[...][None, None, :, :], axis=-1) + bo_ref[...]
    score = jnp.where(m_ref[...] > 0.0, score, -100.0)
    o_ref[...] = score


def cond_str_score_fused(h_str_enc, g_str_s, col_emb_str, params, x_len_j):
    B, T, H = h_str_enc.shape
    _, F4, L, _ = g_str_s.shape
    g2 = g_str_s.reshape(B, F4 * L, H)
    wh, bh = params["cond_str_out_h"]
    wg, bg = params["cond_str_out_g"]
    wc, bc = params["cond_str_out_col"]
    wo, bo = params["cond_str_out"]
    mask = (jnp.arange(T)[None, :] < x_len_j[:, None]).astype(jnp.float32).reshape(B, 1, T)
    return pl.pallas_call(
        _str_score_kernel,
        out_shape=jax.ShapeDtypeStruct((B, F4, L, T), jnp.float32),
        grid=(B,),
        in_specs=[
            pl.BlockSpec((None, T, H), lambda b: (b, 0, 0)),
            pl.BlockSpec((None, F4 * L, H), lambda b: (b, 0, 0)),
            pl.BlockSpec((None, F4, H), lambda b: (b, 0, 0)),
            pl.BlockSpec((H, H), lambda b: (0, 0)),
            pl.BlockSpec((1, H), lambda b: (0, 0)),
            pl.BlockSpec((H, H), lambda b: (0, 0)),
            pl.BlockSpec((1, H), lambda b: (0, 0)),
            pl.BlockSpec((H, H), lambda b: (0, 0)),
            pl.BlockSpec((1, H), lambda b: (0, 0)),
            pl.BlockSpec((1, H), lambda b: (0, 0)),
            pl.BlockSpec((1, 1), lambda b: (0, 0)),
            pl.BlockSpec((None, 1, T), lambda b: (b, 0, 0)),
        ],
        out_specs=pl.BlockSpec((None, F4, L, T), lambda b: (b, 0, 0, 0)),
        compiler_params=pltpu.CompilerParams(dimension_semantics=("parallel",)),
    )(h_str_enc, g2, col_emb_str,
      wh, bh.reshape(1, H), wg, bg.reshape(1, H), wc, bc.reshape(1, H),
      wo.T, bo.reshape(1, 1), mask)


# ----------------------------------------------------------------------------
# In-kernel RNN recurrences (gate matmuls precomputed outside; h/c stay resident)
# ----------------------------------------------------------------------------
def _bilstm_rec_kernel(gxf_ref, gxb_ref, wf_ref, wb_ref, bf_ref, bb_ref,
                       len_ref, outf_ref, outb_ref):
    T, Bn, H4 = gxf_ref.shape
    H2 = H4 // 4
    wf = wf_ref[...].astype(jnp.bfloat16)
    wb = wb_ref[...].astype(jnp.bfloat16)
    bf = bf_ref[...]
    bb = bb_ref[...]
    lens = len_ref[...]                                       # (Bn, 1) int32

    def cell(gx_t, h, c, w, b):
        g = gx_t + jnp.dot(h.astype(jnp.bfloat16), w,
                           preferred_element_type=jnp.float32) + b
        i = _sigmoid(g[:, 0:H2])
        f = _sigmoid(g[:, H2:2 * H2])
        gg = jnp.tanh(g[:, 2 * H2:3 * H2])
        o = _sigmoid(g[:, 3 * H2:4 * H2])
        c_new = f * c + i * gg
        h_new = o * jnp.tanh(c_new)
        return h_new, c_new

    def body(t, carry):
        hf, cf, hb, cb = carry
        hn, cn = cell(gxf_ref[t], hf, cf, wf, bf)
        vld = lens > t
        hf = jnp.where(vld, hn, hf)
        cf = jnp.where(vld, cn, cf)
        outf_ref[t] = jnp.where(vld, hn, 0.0)
        tt = T - 1 - t
        hn, cn = cell(gxb_ref[tt], hb, cb, wb, bb)
        vld = lens > tt
        hb = jnp.where(vld, hn, hb)
        cb = jnp.where(vld, cn, cb)
        outb_ref[tt] = jnp.where(vld, hn, 0.0)
        return hf, cf, hb, cb

    z = jnp.zeros((Bn, H2), jnp.float32)
    lax.fori_loop(0, T, body, (z, z, z, z))


def bilstm_rec_stack(gx_f, gx_b, w_f, w_b, b_f, b_b, lens2):
    """Stacked bi-LSTM recurrences for E encoders sharing the same input length."""
    E, T, Bn, H4 = gx_f.shape
    H2 = H4 // 4
    out_f, out_b = pl.pallas_call(
        _bilstm_rec_kernel,
        out_shape=(jax.ShapeDtypeStruct((E, T, Bn, H2), jnp.float32),
                   jax.ShapeDtypeStruct((E, T, Bn, H2), jnp.float32)),
        grid=(E,),
        in_specs=[
            pl.BlockSpec((None, T, Bn, H4), lambda e: (e, 0, 0, 0)),
            pl.BlockSpec((None, T, Bn, H4), lambda e: (e, 0, 0, 0)),
            pl.BlockSpec((None, H2, H4), lambda e: (e, 0, 0)),
            pl.BlockSpec((None, H2, H4), lambda e: (e, 0, 0)),
            pl.BlockSpec((None, 1, H4), lambda e: (e, 0, 0)),
            pl.BlockSpec((None, 1, H4), lambda e: (e, 0, 0)),
            pl.BlockSpec((Bn, 1), lambda e: (0, 0)),
        ],
        out_specs=(pl.BlockSpec((None, T, Bn, H2), lambda e: (e, 0, 0, 0)),
                   pl.BlockSpec((None, T, Bn, H2), lambda e: (e, 0, 0, 0))),
        compiler_params=pltpu.CompilerParams(dimension_semantics=("parallel",)),
    )(gx_f, gx_b, w_f, w_b, b_f, b_b, lens2)
    return jnp.concatenate([out_f, out_b], axis=-1)           # (E, T, Bn, 2*H2)


def _bigru_rec_kernel(gxf_ref, gxb_ref, wf_ref, wb_ref, bf_ref, bb_ref,
                      len_ref, outf_ref, outb_ref):
    T, Bn, H3 = gxf_ref.shape
    H2 = H3 // 3
    wf = wf_ref[...].astype(jnp.bfloat16)
    wb = wb_ref[...].astype(jnp.bfloat16)
    bf = bf_ref[...]
    bb = bb_ref[...]
    lens = len_ref[...]

    def cell(gx_t, h, w, b):
        hh = jnp.dot(h.astype(jnp.bfloat16), w,
                     preferred_element_type=jnp.float32) + b
        r = _sigmoid(gx_t[:, 0:H2] + hh[:, 0:H2])
        z = _sigmoid(gx_t[:, H2:2 * H2] + hh[:, H2:2 * H2])
        n = jnp.tanh(gx_t[:, 2 * H2:3 * H2] + r * hh[:, 2 * H2:3 * H2])
        return (1.0 - z) * n + z * h

    def body(t, carry):
        hf, hb = carry
        hn = cell(gxf_ref[t], hf, wf, bf)
        vld = lens > t
        hf = jnp.where(vld, hn, hf)
        outf_ref[t] = jnp.where(vld, hn, 0.0)
        tt = T - 1 - t
        hn = cell(gxb_ref[tt], hb, wb, bb)
        vld = lens > tt
        hb = jnp.where(vld, hn, hb)
        outb_ref[tt] = jnp.where(vld, hn, 0.0)
        return hf, hb

    z = jnp.zeros((Bn, H2), jnp.float32)
    lax.fori_loop(0, T, body, (z, z))


def bigru_rec(gx_f, gx_b, w_f, w_b, b_f, b_b, lens2):
    T, Bn, H3 = gx_f.shape
    H2 = H3 // 3
    out_f, out_b = pl.pallas_call(
        _bigru_rec_kernel,
        out_shape=(jax.ShapeDtypeStruct((T, Bn, H2), jnp.float32),
                   jax.ShapeDtypeStruct((T, Bn, H2), jnp.float32)),
    )(gx_f, gx_b, w_f, w_b, b_f, b_b, lens2)
    return jnp.concatenate([out_f, out_b], axis=-1)


def _lstm_dec_kernel(gx_ref, w_ref, b_ref, out_ref):
    L, Bn, H4 = gx_ref.shape
    H = H4 // 4
    w = w_ref[...].astype(jnp.bfloat16)
    b = b_ref[...]

    def body(t, carry):
        h, c = carry
        g = gx_ref[t] + jnp.dot(h.astype(jnp.bfloat16), w,
                                preferred_element_type=jnp.float32) + b
        i = _sigmoid(g[:, 0:H])
        f = _sigmoid(g[:, H:2 * H])
        gg = jnp.tanh(g[:, 2 * H:3 * H])
        o = _sigmoid(g[:, 3 * H:4 * H])
        c = f * c + i * gg
        h = o * jnp.tanh(c)
        out_ref[t] = h
        return h, c

    z = jnp.zeros((Bn, H), jnp.float32)
    lax.fori_loop(0, L, body, (z, z))


def lstm_decoder_rec(gx, w_hh_t, b_hh):
    L, B4, H4 = gx.shape
    H = H4 // 4
    return pl.pallas_call(
        _lstm_dec_kernel,
        out_shape=jax.ShapeDtypeStruct((L, B4, H), jnp.float32),
    )(gx, w_hh_t, b_hh)


# ----------------------------------------------------------------------------
# Fused encoder front-ends (one wide gate matmul + stacked recurrences)
# ----------------------------------------------------------------------------
def _concat_gate_weights(params, enc_names):
    Ws, bs, sizes = [], [], []
    for name in enc_names:
        for d in ("fwd", "bwd"):
            w_ih, _, b_ih, _ = params[name][d]
            Ws.append(w_ih.T)
            bs.append(b_ih)
            sizes.append(w_ih.shape[0])
    return jnp.concatenate(Ws, axis=1), jnp.concatenate(bs, axis=0), sizes


def fused_x_encoders(x_emb_var, x_len_j, params):
    B, T, _ = x_emb_var.shape
    enc_names = ["cond_num_lstm", "cond_col_lstm", "cond_op_lstm", "cond_str_lstm"]
    W_cat, b_cat, sizes = _concat_gate_weights(params, enc_names)
    gx_all = pallas_linear(x_emb_var, W_cat, b_cat)           # (B, T, 480)
    gx_all = jnp.transpose(gx_all, (1, 0, 2))                 # (T, B, 480)
    parts = jnp.split(gx_all, list(np.cumsum(sizes)[:-1]), axis=-1)
    lens2 = x_len_j.reshape(B, 1)

    # bi-GRU (cond_num_lstm, 3 gates)
    pf = params["cond_num_lstm"]["fwd"]
    pb = params["cond_num_lstm"]["bwd"]
    h_num = bigru_rec(parts[0], parts[1], pf[1].T, pb[1].T,
                      pf[3].reshape(1, -1), pb[3].reshape(1, -1), lens2)
    h_num_enc = jnp.transpose(h_num, (1, 0, 2))               # (B, T, N_h)

    # 3 bi-LSTMs in one stacked call (grid over encoders -> v7x megacore parallel)
    lstm_names = enc_names[1:]
    gxf = jnp.stack(parts[2::2], axis=0)                      # (3, T, B, 4*H2)
    gxb = jnp.stack(parts[3::2], axis=0)
    wfs = jnp.stack([params[n]["fwd"][1].T for n in lstm_names], axis=0)
    wbs = jnp.stack([params[n]["bwd"][1].T for n in lstm_names], axis=0)
    bfs = jnp.stack([params[n]["fwd"][3].reshape(1, -1) for n in lstm_names], axis=0)
    bbs = jnp.stack([params[n]["bwd"][3].reshape(1, -1) for n in lstm_names], axis=0)
    h_all = bilstm_rec_stack(gxf, gxb, wfs, wbs, bfs, bbs, lens2)   # (3, T, B, N_h)
    h_all = jnp.transpose(h_all, (0, 2, 1, 3))                # (3, B, T, N_h)
    return h_num_enc, h_all[0], h_all[1], h_all[2]


def build_col_gather(col_len):
    B = len(col_len)
    max_col = max(col_len)
    src = np.zeros((B, max_col), dtype=np.int32)
    valid = np.zeros((B, max_col), dtype=np.float32)
    st = 0
    for b, cur in enumerate(col_len):
        src[b, :cur] = np.arange(st, st + cur)
        valid[b, :cur] = 1.0
        st += cur
    return jnp.asarray(src), jnp.asarray(valid)


def fused_name_encoders(col_inp_var, name_len_j, col_len, params):
    total, Tn, _ = col_inp_var.shape
    enc_names = ["cond_num_name_enc", "cond_col_name_enc",
                 "cond_op_name_enc", "cond_str_name_enc"]
    W_cat, b_cat, sizes = _concat_gate_weights(params, enc_names)
    gx_all = pallas_linear(col_inp_var, W_cat, b_cat)         # (total, Tn, 512)
    gx_all = jnp.transpose(gx_all, (1, 0, 2))                 # (Tn, total, 512)
    parts = jnp.split(gx_all, list(np.cumsum(sizes)[:-1]), axis=-1)
    lens2 = name_len_j.reshape(total, 1)

    gxf = jnp.stack(parts[0::2], axis=0)                      # (4, Tn, total, 4*H2)
    gxb = jnp.stack(parts[1::2], axis=0)
    wfs = jnp.stack([params[n]["fwd"][1].T for n in enc_names], axis=0)
    wbs = jnp.stack([params[n]["bwd"][1].T for n in enc_names], axis=0)
    bfs = jnp.stack([params[n]["fwd"][3].reshape(1, -1) for n in enc_names], axis=0)
    bbs = jnp.stack([params[n]["bwd"][3].reshape(1, -1) for n in enc_names], axis=0)
    name_hidden = bilstm_rec_stack(gxf, gxb, wfs, wbs, bfs, bbs, lens2)  # (4,Tn,total,N_h)
    nh = jnp.transpose(name_hidden, (0, 2, 1, 3))             # (4, total, Tn, N_h)
    name_out = nh[:, jnp.arange(total), name_len_j - 1, :]    # (4, total, N_h)
    src, valid = build_col_gather(col_len)                    # vectorized scatter
    e_all = name_out[:, src, :] * valid[None, :, :, None]     # (4, B, max_col, N_h)
    return e_all


# ----------------------------------------------------------------------------
# Host-side glue
# ----------------------------------------------------------------------------
def gen_gt_batch(split_tok_seq, max_tok_num):
    # TODO(synk): data-dependent Python token lists; construction stays on host.
    B = len(split_tok_seq)
    max_len = max([max([len(tok) for tok in tok_seq] + [0])
                   for tok_seq in split_tok_seq]) - 1
    if max_len < 1:
        max_len = 1
    ret_array = np.zeros((B, 4, max_len, max_tok_num), dtype=np.float32)
    ret_len = np.zeros((B, 4))
    for b, tok_seq in enumerate(split_tok_seq):
        idx = 0
        for idx, one_tok_seq in enumerate(tok_seq):
            out_one_tok_seq = one_tok_seq[:-1]
            ret_len[b, idx] = len(out_one_tok_seq)
            for t, tok_id in enumerate(out_one_tok_seq):
                ret_array[b, idx, t, tok_id] = 1
        if idx < 3:
            ret_array[b, idx + 1:, 0, 1] = 1
            ret_len[b, idx + 1:] = 1
    return jnp.asarray(ret_array), ret_len


def build_col_emb_idx(chosen_col_gt):
    B = len(chosen_col_gt)
    idx = np.zeros((B, 4), dtype=np.int32)
    for b, chosen in enumerate(chosen_col_gt):
        for i in range(4):
            idx[b, i] = chosen[i] if i < len(chosen) else 0
    return jnp.asarray(idx)


# ----------------------------------------------------------------------------
# Parameters (deterministic synthetic init)
# ----------------------------------------------------------------------------
def init_params(key, N_word, N_h, max_tok_num):
    H2 = N_h // 2
    ks = jax.random.split(key, 64)
    it = iter(ks)

    def nxt():
        return next(it)

    def lin(din, dout):
        k1, k2 = jax.random.split(nxt())
        return (0.1 * jax.random.normal(k1, (din, dout), jnp.float32),
                0.1 * jax.random.normal(k2, (dout,), jnp.float32))

    def rnn_dir(din, hid, gates):
        k = jax.random.split(nxt(), 4)
        return (0.1 * jax.random.normal(k[0], (gates * hid, din), jnp.float32),
                0.1 * jax.random.normal(k[1], (gates * hid, hid), jnp.float32),
                0.1 * jax.random.normal(k[2], (gates * hid,), jnp.float32),
                0.1 * jax.random.normal(k[3], (gates * hid,), jnp.float32))

    def bi(din, hid, gates):
        return {"fwd": rnn_dir(din, hid, gates), "bwd": rnn_dir(din, hid, gates)}

    p = {}
    p["cond_num_lstm"] = bi(N_word, H2, 3)          # GRU (3 gates)
    p["cond_num_att"] = lin(N_h, 1)
    p["cond_num_out_1"] = lin(N_h, N_h)
    p["cond_num_out_2"] = lin(N_h, 5)
    p["cond_num_name_enc"] = bi(N_word, H2, 4)
    p["cond_num_col_att"] = lin(N_h, 1)
    p["cond_col_lstm"] = bi(N_word, H2, 4)
    p["cond_col_att"] = lin(N_h, 1)                 # use_ca=False -> Linear(N_h, 1)
    p["cond_col_name_enc"] = bi(N_word, H2, 4)
    p["cond_col_out_K"] = lin(N_h, N_h)
    p["cond_col_out_col"] = lin(N_h, N_h)
    p["cond_col_out"] = lin(N_h, 1)
    p["cond_op_lstm"] = bi(N_word, H2, 4)
    p["cond_op_att"] = lin(N_h, 1)
    p["cond_op_out_K"] = lin(N_h, N_h)
    p["cond_op_name_enc"] = bi(N_word, H2, 4)
    p["cond_op_out_col"] = lin(N_h, N_h)
    p["cond_op_out_1"] = lin(N_h, N_h)
    p["cond_op_out_2"] = lin(N_h, 3)
    p["cond_str_lstm"] = bi(N_word, H2, 4)
    p["cond_str_decoder"] = rnn_dir(max_tok_num, N_h, 4)
    p["cond_str_name_enc"] = bi(N_word, H2, 4)
    p["cond_str_out_g"] = lin(N_h, N_h)
    p["cond_str_out_h"] = lin(N_h, N_h)
    p["cond_str_out_col"] = lin(N_h, N_h)
    p["cond_str_out"] = lin(N_h, 1)
    p["att_weight_c"] = lin(N_h, 1)
    p["att_weight_q"] = lin(N_h, 1)
    p["att_weight_cq"] = lin(N_h, 1)
    return p


# ----------------------------------------------------------------------------
# Forward pass (use_ca=False, reinforce=False, gt_cond & gt_where provided)
# ----------------------------------------------------------------------------
def sqlnet_cond_forward(params, x_emb_var, x_len, col_inp_var, col_name_len,
                        col_len, col_num, gt_where, gt_cond, max_tok_num, N_h):
    B = len(x_len)
    x_len_j = jnp.asarray(x_len, jnp.int32)
    col_num_j = jnp.asarray(col_num, jnp.int32)
    name_len_j = jnp.asarray(col_name_len, jnp.int32)

    # fused encoders (one wide gate matmul each + stacked in-kernel recurrences)
    e_all = fused_name_encoders(col_inp_var, name_len_j, col_len, params)
    e_num_col, e_cond_col, e_col_op, e_col_str = e_all[0], e_all[1], e_all[2], e_all[3]
    h_num_enc, h_col_enc_raw, h_op_enc, h_str_enc = fused_x_encoders(
        x_emb_var, x_len_j, params)

    # ---------------- condition number ----------------
    # K_num_col feeds cond_num_col2hid1/2, whose outputs are never consumed in the
    # reference forward (run_lstm gets hidden=None); kept only for structural parity.
    K_num_col = att_pool(e_num_col, *params["cond_num_col_att"], col_num_j, True)
    del K_num_col
    K_cond_num = att_pool(h_num_enc, *params["cond_num_att"], x_len_j, True)
    cond_num_score = mlp_head(K_cond_num, params["cond_num_out_1"],
                              params["cond_num_out_2"])                       # (B, 5)

    # ---------------- condition column ----------------
    h_col_enc = att_flow(h_col_enc_raw, e_cond_col, params)
    # reference bug preserved: pooling weights are the masked *raw* scores (softmax unused)
    K_cond_col = att_pool(h_col_enc, *params["cond_col_att"], x_len_j, False)
    cond_col_score = col_score(K_cond_col, e_cond_col, params, col_num_j)     # (B, C)

    chosen_col_gt = [[x[0] for x in one_gt_cond] for one_gt_cond in gt_cond]
    col_idx = build_col_emb_idx(chosen_col_gt)
    batch_idx = jnp.arange(B)[:, None]

    # ---------------- condition op ----------------
    col_emb = e_col_op[batch_idx, col_idx]                                    # (B, 4, N_h)
    K_cond_op = att_pool(h_op_enc, *params["cond_op_att"], x_len_j, True)
    cond_op_score = op_score(K_cond_op, col_emb, params)                      # (B, 4, 3)

    # ---------------- condition string ----------------
    col_emb_str = e_col_str[batch_idx, col_idx]
    gt_tok_seq, _ = gen_gt_batch(gt_where, max_tok_num)                       # (B, 4, L, V)
    L = gt_tok_seq.shape[2]
    w_ih, w_hh, b_ih, b_hh = params["cond_str_decoder"]
    gx_dec = pallas_linear(gt_tok_seq.reshape(B * 4, L, max_tok_num), w_ih.T, b_ih)
    gx_dec = jnp.transpose(gx_dec, (1, 0, 2))                                 # (L, B*4, 4*N_h)
    g_flat = lstm_decoder_rec(gx_dec, w_hh.T, b_hh.reshape(1, -1))            # (L, B*4, N_h)
    g_str_s = jnp.transpose(g_flat, (1, 0, 2)).reshape(B, 4, L, N_h)
    cond_str_score = cond_str_score_fused(h_str_enc, g_str_s, col_emb_str,
                                          params, x_len_j)                    # (B, 4, L, T)

    return cond_num_score, cond_col_score, cond_op_score, cond_str_score


# ----------------------------------------------------------------------------
if __name__ == "__main__":
    # Small, module-consistent shapes (N_word = embedding, N_h = hidden, N_depth = 1)
    N_word_s, N_h_s, N_depth, max_tok_num, max_col_num = 32, 32, 1, 16, 6

    key = jax.random.PRNGKey(0)
    k_in, k_par = jax.random.split(key)
    params = init_params(k_par, N_word_s, N_h_s, max_tok_num)

    B, T_x, max_name_len = 2, 8, 4
    x_len = np.array([8, 6], dtype=np.int64)
    col_len = [3, 4]                                   # columns per batch element
    col_name_len = np.array([2, 3, 2, 4, 2, 3, 2], dtype=np.int64)
    total_cols = int(sum(col_len))

    k1, k2 = jax.random.split(k_in)
    x_emb_var = jax.random.normal(k1, (B, T_x, N_word_s), jnp.float32)
    col_inp_var = jax.random.normal(k2, (total_cols, max_name_len, N_word_s), jnp.float32)
    col_num = col_len
    gt_cond = [[(1, 0, "v"), (2, 1, "v")], [(0, 0, "v")]]
    gt_where = [[[0, 3, 5, 1], [0, 2, 1]], [[0, 4, 1]]]

    out = sqlnet_cond_forward(params, x_emb_var, x_len, col_inp_var, col_name_len,
                              col_len, col_num, gt_where, gt_cond,
                              max_tok_num=max_tok_num, N_h=N_h_s)
    jax.block_until_ready(out)
    print("KERNEL_OK")
</pallas_src>

<mosaic_0001>
module attributes {stable_mosaic.version = 11 : i64} {
  func.func @_linear_kernel(%arg0: memref<28x32xf32, #tpu.memory_space<vmem>>, %arg1: memref<32x512xf32, #tpu.memory_space<vmem>>, %arg2: memref<1x512xf32, #tpu.memory_space<vmem>>, %arg3: memref<28x512xf32, #tpu.memory_space<vmem>>) attributes {dimension_semantics = [], scalar_prefetch = 0 : i64, scratch_operands = 0 : i64, tpu.core_type = #tpu.core_type<tc>} {
    %c0 = arith.constant 0 : index
    %c0_0 = arith.constant 0 : index
    %0 = vector.load %arg0[%c0, %c0_0] : memref<28x32xf32, #tpu.memory_space<vmem>>, vector<28x32xf32>
    %1 = arith.truncf %0 : vector<28x32xf32> to vector<28x32xbf16>
    %c0_1 = arith.constant 0 : index
    %c0_2 = arith.constant 0 : index
    %2 = vector.load %arg1[%c0_1, %c0_2] : memref<32x512xf32, #tpu.memory_space<vmem>>, vector<32x512xf32>
    %3 = arith.truncf %2 : vector<32x512xf32> to vector<32x512xbf16>
    %cst = arith.constant dense<0.000000e+00> : vector<28x512xf32>
    %4 = tpu.matmul %1, %3, %cst {dimension_numbers = #tpu.dot_dimension_numbers<[1], [0], [0], [1], [0, 0, 1, 1], [], []>} : vector<28x32xbf16>, vector<32x512xbf16>, vector<28x512xf32> -> vector<28x512xf32>
    %c0_3 = arith.constant 0 : index
    %c0_4 = arith.constant 0 : index
    %5 = vector.load %arg2[%c0_3, %c0_4] : memref<1x512xf32, #tpu.memory_space<vmem>>, vector<1x512xf32>
    %6 = vector.broadcast %5 : vector<1x512xf32> to vector<28x512xf32>
    %7 = arith.addf %4, %6 : vector<28x512xf32>
    %c0_5 = arith.constant 0 : index
    %c0_6 = arith.constant 0 : index
    %8 = vector.load %arg3[%c0_5, %c0_6] : memref<28x512xf32, #tpu.memory_space<vmem>>, vector<28x512xf32>
    tpu.vector_store %arg3[%c0_5, %c0_6], %7 {strides = array<i32>} : memref<28x512xf32, #tpu.memory_space<vmem>>, vector<28x512xf32>,
    return
  }
}

</mosaic_0001>

<bundles_post_ra>
// kernel: tpu_custom_call.1
= control target key start
LH: loop header
LB: loop body
LE: loop exit
PB: predicated region body
PF: predicated region fallthrough
CT: control target
= control target key end

     0   :  { %8 = vsyncpa [#allocation3], 0  ;;  %s400_s0 = inlined_call_operand.hbm [shape: f32[28,32], index: 0, kind: input, shape index: {}]   ;;  %s401_s1 = inlined_call_operand.hbm [shape: f32[32,512], index: 1, kind: input, shape index: {}]   ;;  %s402_s2 = inlined_call_operand.vmem [shape: f32[1,512], index: 2, kind: input, shape index: {}]   ;;  %s403_s3 = inlined_call_operand.hbm [shape: f32[28,512], index: 3, kind: output, shape index: {}]  }
   0x1   :  { %9 = vsyncpa [#allocation6], 0 }
   0x2   :  { %10 = vsyncpa [#allocation4], 0  ;;  %s327_s12 = smov [#allocation2]   ;;  %s255_s16 = scalar_lea.hbm %s400_s0, 512 }
   0x3   :  { %s16_s13 = sshll.u32 %s327_s12, 4  ;;  %p256_p0 = scmp.ne.s32.totalorder %s400_s0, %s255_s16  ;;  %s17_s13 = int_to_ptr.vmem [resolvable:$true] %s16_s13 }
   0x4   :  { %p259_p1 = scmp.lt.u32.totalorder %s255_s16, %s400_s0 }
   0x6   :  { %p261_p2 = pnand %p259_p1, %p256_p0 }
   0x8   :  { %264 = shalt.err (!%p261_p2)
}
   0x9   :  { %s265_s21 = scalar_lea.vmem %s17_s13, 512  ;;  %p270_p4 = scmp.lt.s32.totalorder %s17_s13, %s17_s13 }
   0xa   :  { %p266_p3 = scmp.ne.s32.totalorder %s17_s13, %s265_s21  ;;  %p271_p5 = scmp.lt.s32.totalorder %s265_s21, %s265_s21 }
   0xc   :  { %p272_p6 = por %p271_p5, %p270_p4 }
   0xe   :  { %p273_p7 = pnand %p272_p6, %p266_p3 }
  0x10   :  { %276 = shalt.err (!%p273_p7)
}
  0x11   :  { %s328_s22 = smov 128   ;;  %s329_s23 = smov 8  }
  0x12   :  { %22 = dma.hbm_to_vmem [thread:$0]  %s400_s0, 512, %s17_s13, [#allocation3], %s328_s22, %s328_s22, %s329_s23  }
  0x13   :  { %s330_s26 = smov [#allocation5]   ;;  %s277_s30 = scalar_lea.hbm %s401_s1, 2048 }
  0x14   :  { %s28_s27 = sshll.u32 %s330_s26, 4  ;;  %p278_p8 = scmp.ne.s32.totalorder %s401_s1, %s277_s30  ;;  %s29_s27 = int_to_ptr.vmem [resolvable:$true] %s28_s27 }
  0x15   :  { %p281_p9 = scmp.lt.u32.totalorder %s277_s30, %s401_s1 }
  0x17   :  { %p283_p10 = pnand %p281_p9, %p278_p8 }
  0x19   :  { %286 = shalt.err (!%p283_p10)
}
  0x1a   :  { %s287_s8 = scalar_lea.vmem %s29_s27, 2048  ;;  %p292_p12 = scmp.lt.s32.totalorder %s29_s27, %s29_s27 }
  0x1b   :  { %p288_p11 = scmp.ne.s32.totalorder %s29_s27, %s287_s8  ;;  %p293_p13 = scmp.lt.s32.totalorder %s287_s8, %s287_s8 }
  0x1d   :  { %p294_p0 = por %p293_p13, %p292_p12 }
  0x1f   :  { %p295_p1 = pnand %p294_p0, %p288_p11 }
  0x21   :  { %298 = shalt.err (!%p295_p1)
}
  0x22   :  { %s331_s0 = smov 512   ;;  %s332_s9 = smov 32  }
  0x23   :  { %34 = dma.hbm_to_vmem [thread:$0]  %s401_s1, 2048, %s29_s27, [#allocation6], %s331_s0, %s331_s0, %s332_s9  }
  0x24   :  { %321 = dma.done.wait [#allocation3], 512  }
  0x25   :  { %322 = vsyncadd [#allocation3], 4294966784 }
  0x26   :  { %323 = dma.done.wait [#allocation6], 2048  }
  0x27   :  { %324 = vsyncadd [#allocation6], 4294965248  ;;  %v333_v0 = vmov 0   ;;  %v51_v1 = vld [vmem:[#allocation5 + $0x8] sm:$0xff]  ;;  %v53_v3 = vld [vmem:[#allocation5 + $0x18] sm:$0xff]  ;;  %vm96_vm0 = vcmask 261120   ;;  %v76_v31 = vlaneseq }
  0x28   :  { %135 = vmatprep.mubr.bf16.mxu0 %v333_v0  ;;  %188 = vmatprep.mubr.bf16.mxu1 %v333_v0  ;;  %v55_v2 = vld [vmem:[#allocation5 + $0x28] sm:$0xff]  ;;  %v57_v5 = vld [vmem:[#allocation5 + $0x38] sm:$0xff]  ;;  %v50_v6 = vld [vmem:[#allocation5] sm:$0xff] }
  0x29   :  { %v67_v4 = vpack.c.bf16 %v55_v2, %v51_v1  ;;  %v54_v7 = vld [vmem:[#allocation5 + $0x20] sm:$0xff]  ;;  %v69_v8 = vpack.c.bf16 %v57_v5, %v53_v3  ;;  %v52_v10 = vld [vmem:[#allocation5 + $0x10] sm:$0xff]  ;;  %v59_v12 = vld [vmem:[#allocation5 + $0x48] sm:$0xff]  ;;  %v77_v32 = vshrl.u32 %v76_v31, 7 }
  0x2a   :  { %v66_v9 = vpack.c.bf16 %v54_v7, %v50_v6  ;;  %v56_v11 = vld [vmem:[#allocation5 + $0x30] sm:$0xff]  ;;  %v63_v14 = vld [vmem:[#allocation5 + $0x68] sm:$0xff]  ;;  %v61_v15 = vld [vmem:[#allocation5 + $0x58] sm:$0xff] }
  0x2b   :  { %103 = vmatprep.subr.bf16.mxu0 %v67_v4  ;;  %v68_v13 = vpack.c.bf16 %v56_v11, %v52_v10  ;;  %v65_v16 = vld [vmem:[#allocation5 + $0x78] sm:$0xff]  ;;  %156 = vmatprep.subr.bf16.mxu1 %v69_v8  ;;  %v71_v17 = vpack.c.bf16 %v63_v14, %v59_v12  ;;  %v58_v19 = vld [vmem:[#allocation5 + $0x40] sm:$0xff]  ;;  %v60_v21 = vld [vmem:[#allocation5 + $0x50] sm:$0xff]  ;;  %v78_v33 = vsub.s32 0, %v77_v32  ;;  %v86_v35 = vsub.s32 2, %v77_v32 }
  0x2c   :  { %104 = vmatpush1.bf16.msra.mxu0 %v66_v9  ;;  %v73_v18 = vpack.c.bf16 %v65_v16, %v61_v15  ;;  %v62_v20 = vld [vmem:[#allocation5 + $0x60] sm:$0xff]  ;;  %v64_v23 = vld [vmem:[#allocation5 + $0x70] sm:$0xff]  ;;  %v45_v25 = vld [vmem:[#allocation2 + $0x8] sm:$0xff]  ;;  %v82_v36 = vsub.s32 1, %v77_v32  ;;  %v90_v37 = vsub.s32 3, %v77_v32 }
  0x2d   :  { %157 = vmatpush1.bf16.msra.mxu1 %v68_v13  ;;  %v70_v22 = vpack.c.bf16 %v62_v20, %v58_v19  ;;  %v44_v24 = vld [vmem:[#allocation2] sm:$0xff]  ;;  %105 = vmatprep.subr.bf16.mxu0 %v71_v17  ;;  %v72_v26 = vpack.c.bf16 %v64_v23, %v60_v21  ;;  %v46_v28 = vld [vmem:[#allocation2 + $0x10] sm:$0xff]  ;;  %v47_v29 = vld [vmem:[#allocation2 + $0x18] sm:$0xf] }
  0x2e   :  { %158 = vmatprep.subr.bf16.mxu1 %v73_v18  ;;  %v48_v27 = vpack.c.bf16 %v45_v25, %v44_v24  ;;  %v49_v30 = vpack.c.bf16 %v47_v29, %v46_v28  ;;  %v74_v34 = vld [vmem:[%s402_s2] sm:$0xf]  ;;  %s334_s2 = smov [#allocation7]  }
  0x2f   :  { %v79_v38 = vrot.slane %v74_v34, %v78_v33  ;;  %v87_v39 = vrot.slane %v74_v34, %v86_v35  ;;  %v83_v40 = vrot.slane %v74_v34, %v82_v36  ;;  %v91_v41 = vrot.slane %v74_v34, %v90_v37  ;;  %s230_s13 = sshll.u32 %s334_s2, 4  ;;  %s231_s13 = int_to_ptr.vmem [resolvable:$true] %s230_s13 }
  0x30   :  { %106 = vmatpush1.bf16.msra.mxu0 %v70_v22  ;;  %s299_s14 = scalar_lea.vmem %s231_s13, 2048  ;;  %p304_p3 = scmp.lt.s32.totalorder %s231_s13, %s231_s13 }
  0x31   :  { %159 = vmatpush1.bf16.msra.mxu1 %v72_v26  ;;  %p300_p2 = scmp.ne.s32.totalorder %s231_s13, %s299_s14  ;;  %p305_p4 = scmp.lt.s32.totalorder %s299_s14, %s299_s14 }
  0x33   :  { %243 = vmatmul.mubr.msk.bf16.vlgmr.msra.gmra.mrb[0].mxu0 %vm96_vm0, %v48_v27  ;;  %p306_p5 = por %p305_p4, %p304_p3 }
  0x34   :  { %245 = vmatmul.mubr.msk.bf16.vlgmr.msra.gmra.mrb[0].mxu1 %vm96_vm0, %v48_v27  ;;  %145 = vmatprep.mubr.bf16.mxu0 %v333_v0 }
  0x35   :  { %198 = vmatprep.mubr.bf16.mxu1 %v333_v0  ;;  %p307_p6 = pnand %p306_p5, %p300_p2 }
  0x3b   :  { %244 = vmatmul.mubr.msk.bf16.gmra.mrb[4].mxu0 %vm96_vm0, %v49_v30 }
  0x3c   :  { %246 = vmatmul.mubr.msk.bf16.gmra.mrb[4].mxu1 %vm96_vm0, %v49_v30 }
 0x106   :  { %v137_v42 = vpop.f32.mrb[0].mxu0 }
 0x107   :  { %v138_v43 = vadd.f32 %v137_v42, %v79_v38  ;;  %v190_v44 = vpop.f32.mrb[0].mxu1  ;;  %v139_v45 = vpop.f32.mrb[1].mxu0 }
 0x108   :  { %v191_v46 = vadd.f32 %v190_v44, %v87_v39  ;;  %v140_v47 = vadd.f32 %v139_v45, %v83_v40  ;;  %v192_v48 = vpop.f32.mrb[1].mxu1  ;;  %v141_v49 = vpop.f32.mrb[2].mxu0 }
 0x109   :  { %209 = vst [vmem:[#allocation7] sm:$0xff] %v138_v43  ;;  %v193_v50 = vadd.f32 %v192_v48, %v91_v41  ;;  %v142_v51 = vadd.f32 %v141_v49, %v79_v38  ;;  %v194_v52 = vpop.f32.mrb[2].mxu1  ;;  %v143_v53 = vpop.f32.mrb[3].mxu0 }
 0x10a   :  { %211 = vst [vmem:[#allocation7 + $0x10] sm:$0xff] %v191_v46  ;;  %210 = vst [vmem:[#allocation7 + $0x8] sm:$0xff] %v140_v47  ;;  %v195_v54 = vadd.f32 %v194_v52, %v87_v39  ;;  %v144_v55 = vadd.f32 %v143_v53, %v83_v40  ;;  %v196_v56 = vpop.f32.mrb[3].mxu1 }
 0x10b   :  { %212 = vst [vmem:[#allocation7 + $0x18] sm:$0xff] %v193_v50  ;;  %213 = vst [vmem:[#allocation7 + $0x20] sm:$0xff] %v142_v51  ;;  %v197_v57 = vadd.f32 %v196_v56, %v91_v41 }
 0x10c   :  { %215 = vst [vmem:[#allocation7 + $0x30] sm:$0xff] %v195_v54  ;;  %214 = vst [vmem:[#allocation7 + $0x28] sm:$0xff] %v144_v55 }
 0x10d   :  { %216 = vst [vmem:[#allocation7 + $0x38] sm:$0xff] %v197_v57 }
 0x10e   :  { %v147_v58 = vpop.f32.mrb[4].mxu0 }
 0x10f   :  { %v148_v59 = vadd.f32 %v147_v58, %v79_v38  ;;  %v200_v60 = vpop.f32.mrb[4].mxu1  ;;  %v149_v61 = vpop.f32.mrb[5].mxu0 }
 0x110   :  { %v201_v62 = vadd.f32 %v200_v60, %v87_v39  ;;  %v150_v63 = vadd.f32 %v149_v61, %v83_v40  ;;  %v202_v0 = vpop.f32.mrb[5].mxu1  ;;  %v151_v1 = vpop.f32.mrb[6].mxu0 }
 0x111   :  { %217 = vst [vmem:[#allocation7 + $0x40] sm:$0xff] %v148_v59  ;;  %v203_v2 = vadd.f32 %v202_v0, %v91_v41  ;;  %v152_v3 = vadd.f32 %v151_v1, %v79_v38  ;;  %v204_v4 = vpop.f32.mrb[6].mxu1  ;;  %v153_v5 = vpop.f32.mrb[7].mxu0 }
 0x112   :  { %219 = vst [vmem:[#allocation7 + $0x50] sm:$0xff] %v201_v62  ;;  %218 = vst [vmem:[#allocation7 + $0x48] sm:$0xff] %v150_v63  ;;  %v205_v6 = vadd.f32 %v204_v4, %v87_v39  ;;  %v154_v7 = vadd.f32 %v153_v5, %v83_v40  ;;  %v206_v8 = vpop.f32.mrb[7].mxu1 }
 0x113   :  { %220 = vst [vmem:[#allocation7 + $0x58] sm:$0xff] %v203_v2  ;;  %221 = vst [vmem:[#allocation7 + $0x60] sm:$0xf] %v152_v3  ;;  %v207_v9 = vadd.f32 %v206_v8, %v91_v41 }
 0x114   :  { %223 = vst [vmem:[#allocation7 + $0x70] sm:$0xf] %v205_v6  ;;  %222 = vst [vmem:[#allocation7 + $0x68] sm:$0xf] %v154_v7 }
 0x115   :  { %224 = vst [vmem:[#allocation7 + $0x78] sm:$0xf] %v207_v9 }
 0x116   :  { %310 = shalt.err (!%p307_p6)
}
 0x117   :  { %s311_s17 = scalar_lea.hbm %s403_s3, 2048 }
 0x118   :  { %p312_p7 = scmp.ne.s32.totalorder %s403_s3, %s311_s17  ;;  %p315_p8 = scmp.lt.u32.totalorder %s311_s17, %s403_s3 }
 0x11a   :  { %p317_p9 = pnand %p315_p8, %p312_p7 }
 0x11c   :  { %320 = shalt.err (!%p317_p9)
}
 0x11d   :  { %236 = dma.vmem_to_hbm [thread:$0]  %s231_s13, 2048, %s403_s3, [#allocation4], %s331_s0, %s331_s0, %s332_s9  }
 0x11e   :  { %325 = dma.done.wait [#allocation4], 2048  }
 0x11f   :  { %326 = vsyncadd [#allocation4], 4294965248 }
 0x120   :  { %240 = vsyncpa [#allocation3], 1 }
 0x121   :  { %241 = vsyncpa [#allocation6], 1 }
 0x122   :  { %242 = vsyncpa [#allocation4], 1 }

</bundles_post_ra>
